<compile_context>
chip_gen: v6e
topology: v6e:2x2x1
jax: 0.10.0
libtpu: 0.0.40
codegen_flags: <defaults>
</compile_context>

<pallas_src>
import functools

import jax
import jax.numpy as jnp
from jax import lax
from jax.experimental import pallas as pl
from jax.experimental.pallas import tpu as pltpu


def _round_up(x, m):
    return ((x + m - 1) // m) * m


def _cdiv(a, b):
    return (a + b - 1) // b


# ------------------------------------------------------------------ param packing

# Index of each packed parameter inside the single weight buffer (see pack_params).
(_W_E1, _B_E1, _W_E2, _B_E2, _W_E3, _B_E3, _W_HEAD, _B_HEAD,
 _W_D1, _B_D1, _W_D2, _B_D2, _W_D3, _B_D3, _W_OUT, _B_OUT,
 _W_PI, _B_PI, _W_AS, _B_AS, _CENTERS, _CSQ) = range(22)


def _block_diag(mats):
    rows = sum(int(m.shape[0]) for m in mats)
    cols = sum(int(m.shape[1]) for m in mats)
    out = jnp.zeros((rows, cols), jnp.float32)
    r = c = 0
    for m in mats:
        out = out.at[r:r + m.shape[0], c:c + m.shape[1]].set(m.astype(jnp.float32))
        r += int(m.shape[0])
        c += int(m.shape[1])
    return out


def _pack_buffer(arrays):
    """Pack small 2-D f32 arrays into one (8,128)-aligned buffer.

    Each array occupies rows [off, off+rows) (off is 8-aligned) and columns
    [0, cols).  Returns (buffer, meta) with meta[i] = (off, rows, cols) so the
    kernel can take static `ref[off:off+rows, :cols]` views (zero-cost).
    """
    width = _round_up(max(128, max(int(a.shape[1]) for a in arrays)), 128)
    offs, row = [], 0
    for a in arrays:
        offs.append(row)
        row += _round_up(int(a.shape[0]), 8)
    buf = jnp.zeros((_round_up(row, 8), width), jnp.float32)
    for a, off in zip(arrays, offs):
        buf = buf.at[off:off + a.shape[0], :a.shape[1]].set(a.astype(jnp.float32))
    meta = tuple((off, int(a.shape[0]), int(a.shape[1])) for a, off in zip(arrays, offs))
    return buf, meta


def pack_params(params, num_views, latent_dim):
    """Pack all VMVAEClustering weights into ONE HBM buffer (single DMA per call).

    Per-view encoder/decoder weights are packed block-diagonally so each layer of
    all views is one MXU matmul on the lane-concatenated activations; the mu/logvar
    heads are fused into one matmul whose output columns are [mu_cat | logvar_cat].
    ||c||^2 for the Student-t distance is precomputed here (grid-invariant).
    """
    views = params["views"]
    L = latent_dim
    h3 = int(views[0]["mu"]["w"].shape[0])
    rep = L * num_views

    def bdiag(name):
        return _block_diag([v[name]["w"] for v in views])

    def bcat(name):
        return jnp.concatenate([v[name]["b"].astype(jnp.float32) for v in views], axis=1)

    # Fused mu/logvar head: columns [0:rep] = mu (per view), [rep:2*rep] = logvar.
    w_head = jnp.zeros((num_views * h3, 2 * rep), jnp.float32)
    for v, p in enumerate(views):
        w_head = w_head.at[v * h3:(v + 1) * h3, v * L:(v + 1) * L].set(
            p["mu"]["w"].astype(jnp.float32))
        w_head = w_head.at[v * h3:(v + 1) * h3, rep + v * L:rep + (v + 1) * L].set(
            p["lv"]["w"].astype(jnp.float32))
    b_head = jnp.concatenate(
        [p["mu"]["b"] for p in views] + [p["lv"]["b"] for p in views], axis=1
    ).astype(jnp.float32)

    centers = params["assign"]["centers"].astype(jnp.float32)
    c_sq = jnp.sum(centers * centers, axis=1, keepdims=True).T        # [1, C], hoisted

    arrays = [
        bdiag("e1"), bcat("e1"), bdiag("e2"), bcat("e2"), bdiag("e3"), bcat("e3"),
        w_head, b_head,
        bdiag("d1"), bcat("d1"), bdiag("d2"), bcat("d2"), bdiag("d3"), bcat("d3"),
        bdiag("out"), bcat("out"),
        params["pi"]["w"].astype(jnp.float32), params["pi"]["b"].astype(jnp.float32),
        params["assign"]["w"].astype(jnp.float32), params["assign"]["b"].astype(jnp.float32),
        centers, c_sq,
    ]
    return _pack_buffer(arrays)


# ------------------------------------------------------------------------ kernel

def _fused_vmvae_kernel(batch_ref, wbuf_ref, out_ref, *, meta, d_total, rep_dim,
                        slab_width, total_width, alpha):
    """Whole VMVAEClustering forward for one batch tile; everything VMEM-resident."""

    def par(i):
        off, rows, cols = meta[i]
        return wbuf_ref[off:off + rows, :cols]        # static slice view of packed buffer

    def dense(h, wi, bi, act=None):
        y = jnp.dot(h, par(wi), preferred_element_type=jnp.float32) + par(bi)
        if act == "relu":
            return jnp.maximum(y, 0.0)
        if act == "sigmoid":
            return jax.nn.sigmoid(y)
        return y

    xin = batch_ref[...]
    x = xin[:, :d_total]                              # [TB, sum(input_dims)]  (x_cat)
    eps = xin[:, d_total:d_total + rep_dim]           # [TB, rep]              (eps_cat)

    # Block-diagonal encoder: one matmul per layer covers all views.
    h = dense(x, _W_E1, _B_E1, "relu")
    h = dense(h, _W_E2, _B_E2, "relu")
    h = dense(h, _W_E3, _B_E3, "relu")
    head = dense(h, _W_HEAD, _B_HEAD)                 # [TB, 2*rep] = [mu_cat | logvar_cat]
    mu = head[:, :rep_dim]
    lv = head[:, rep_dim:]
    z = mu + jnp.exp(0.5 * lv) * eps                  # reparameterization

    # Block-diagonal decoder.
    d = dense(z, _W_D1, _B_D1, "relu")
    d = dense(d, _W_D2, _B_D2, "relu")
    d = dense(d, _W_D3, _B_D3, "relu")
    recon = dense(d, _W_OUT, _B_OUT, "sigmoid")       # [TB, d_total] = [recon_0 | recon_1 | ...]

    # pi = softmax(concat(z, 1) @ Wpi + bpi); z is already the lane concat.
    logits = dense(z, _W_PI, _B_PI)
    logits = logits - jnp.max(logits, axis=-1, keepdims=True)
    e = jnp.exp(logits)
    pi = e / jnp.sum(e, axis=-1, keepdims=True)

    # DEC / Student-t assignment on concat(mu, 1):
    #   a = relu(mu_cat @ Wa + ba);  ||a - c||^2 = ||a||^2 + ||c||^2 - 2 a.c^T
    # (MXU reduction, no [B, C, D] broadcast-subtract; ||c||^2 precomputed in wrapper).
    a = dense(mu, _W_AS, _B_AS, "relu")               # [TB, C]
    centers = par(_CENTERS)                           # [C, rep]  (C == rep enforced)
    a_sq = jnp.sum(a * a, axis=-1, keepdims=True)
    cross = lax.dot_general(a, centers, (((1,), (1,)), ((), ())),
                            preferred_element_type=jnp.float32)
    norm_sq = jnp.maximum(a_sq + par(_CSQ) - 2.0 * cross, 0.0)
    num = 1.0 / (1.0 + norm_sq / alpha)
    power = float(alpha + 1.0) / 2.0
    if power != 1.0:                                  # alpha == 1 -> pow is identity
        if power.is_integer() and power > 0:
            base, acc = num, num
            for _ in range(int(power) - 1):
                acc = acc * base
            num = acc
        else:
            num = num ** power
    predict = num / jnp.sum(num, axis=-1, keepdims=True)

    # Assemble the [TB, slab_width] output row-block in registers (zero tail included)
    # and issue ONE unmasked, lane-dense store — no partial masked stores.
    pieces = [recon, mu, lv, z, pi, predict]
    tail = slab_width - total_width
    if tail > 0:
        pieces.append(jnp.zeros((recon.shape[0], tail), jnp.float32))
    out_ref[...] = jnp.concatenate(pieces, axis=1)


# ----------------------------------------------------------------------- wrapper

def vmvae_clustering_forward(params, batch_inputs, missing_matrix, eps_list,
                             clustering_mode="assignment", alpha=1.0):
    if clustering_mode == "kmeans":
        # TODO(synk): sklearn KMeans.fit_predict (CPU, iterative) has no Pallas equivalent.
        raise NotImplementedError("kmeans clustering branch not implemented")
    del missing_matrix  # only used by the reference in 'kmeans' mode

    num_views = len(batch_inputs)
    input_dims = tuple(int(x.shape[1]) for x in batch_inputs)
    d_total = sum(input_dims)
    latent_dim = int(eps_list[0].shape[1])
    num_classes = int(params["assign"]["w"].shape[1])
    rep_dim = latent_dim * num_views
    B = int(batch_inputs[0].shape[0])

    if num_classes != rep_dim:
        raise ValueError(
            "The reference broadcast (batch.unsqueeze(1) - cluster_centers) requires "
            f"num_classes == latent_dim * num_views (got {num_classes} != {rep_dim}).")

    total_width = d_total + 3 * rep_dim + num_views + num_classes
    slab_width = _round_up(max(total_width, 128), 128)

    # One packed weight buffer (constant index_map -> fetched into VMEM once).
    wbuf, meta = pack_params(params, num_views, latent_dim)

    # One batch-data buffer: [x_0 | ... | x_{V-1} | eps_0 | ... | eps_{V-1}].
    batch_cat = jnp.concatenate(
        [x.astype(jnp.float32) for x in batch_inputs]
        + [e.astype(jnp.float32) for e in eps_list], axis=1)
    in_width = d_total + rep_dim

    # Batch tiling: TB capped at 64 rows (bounds vreg live ranges), aimed at >=2-4
    # tiles so the "parallel" grid axis can shard across TensorCores on v7x.
    # No wrapper-side padding: Pallas masks the ragged final block.
    n_target = max(1, min(4, _cdiv(B, 8)))
    TB = max(8, min(64, _round_up(_cdiv(B, n_target), 8)))
    grid = (_cdiv(B, TB),)

    h1 = int(params["views"][0]["e1"]["w"].shape[1])
    h2 = int(params["views"][0]["e2"]["w"].shape[1])
    h3 = int(params["views"][0]["e3"]["w"].shape[1])
    mm_kn = [
        (d_total, num_views * h1), (num_views * h1, num_views * h2),
        (num_views * h2, num_views * h3), (num_views * h3, 2 * rep_dim),
        (rep_dim, num_views * h3), (num_views * h3, num_views * h2),
        (num_views * h2, num_views * h1), (num_views * h1, d_total),
        (rep_dim, num_views), (rep_dim, num_classes), (num_classes, rep_dim),
    ]
    cost = pl.CostEstimate(
        flops=2 * B * sum(k * n for k, n in mm_kn),
        transcendentals=B * (rep_dim + d_total + num_views),
        bytes_accessed=4 * (int(batch_cat.size) + int(wbuf.size) + B * slab_width))

    kernel = functools.partial(
        _fused_vmvae_kernel, meta=meta, d_total=d_total, rep_dim=rep_dim,
        slab_width=slab_width, total_width=total_width, alpha=float(alpha))

    slab = pl.pallas_call(
        kernel,
        out_shape=jax.ShapeDtypeStruct((B, slab_width), jnp.float32),
        grid=grid,
        in_specs=[
            pl.BlockSpec((TB, in_width), lambda i: (i, 0)),   # batch tile
            pl.BlockSpec(wbuf.shape, lambda i: (0, 0)),       # packed weights (1 DMA)
        ],
        out_specs=pl.BlockSpec((TB, slab_width), lambda i: (i, 0)),
        compiler_params=pltpu.CompilerParams(dimension_semantics=("parallel",)),
        cost_estimate=cost,
    )(batch_cat, wbuf)

    # Unpack the lane-dense slab with cheap XLA slices outside the kernel.
    col = 0
    recons = []
    for d in input_dims:
        recons.append(slab[:, col:col + d])
        col += d
    mus = [slab[:, col + v * latent_dim: col + (v + 1) * latent_dim] for v in range(num_views)]
    col += rep_dim
    log_vars = [slab[:, col + v * latent_dim: col + (v + 1) * latent_dim] for v in range(num_views)]
    col += rep_dim
    sample_z = [slab[:, col + v * latent_dim: col + (v + 1) * latent_dim] for v in range(num_views)]
    col += rep_dim
    pi = slab[:, col:col + num_views]
    col += num_views
    predict = slab[:, col:col + num_classes]

    return predict, recons, mus, log_vars, sample_z, pi


# ---------------------------------------------------------------------- reference

def _reference_forward(params, batch_inputs, eps_list, alpha=1.0):
    """Pure-JAX (unfused) reference of the same forward, for correctness checking."""
    hp = jax.lax.Precision.HIGHEST

    def dense(x, p, act=None):
        y = jnp.dot(x, p["w"], precision=hp) + p["b"]
        if act == "relu":
            return jnp.maximum(y, 0.0)
        if act == "sigmoid":
            return jax.nn.sigmoid(y)
        return y

    recons, mus, lvs, zs = [], [], [], []
    for v, x in enumerate(batch_inputs):
        p = params["views"][v]
        h = dense(x, p["e1"], "relu")
        h = dense(h, p["e2"], "relu")
        h = dense(h, p["e3"], "relu")
        mu = dense(h, p["mu"])
        lv = dense(h, p["lv"])
        z = mu + jnp.exp(0.5 * lv) * eps_list[v]
        d = dense(z, p["d1"], "relu")
        d = dense(d, p["d2"], "relu")
        d = dense(d, p["d3"], "relu")
        recons.append(dense(d, p["out"], "sigmoid"))
        mus.append(mu); lvs.append(lv); zs.append(z)

    zcat = jnp.concatenate(zs, axis=1)
    mucat = jnp.concatenate(mus, axis=1)
    pi = jax.nn.softmax(dense(zcat, params["pi"]), axis=-1)

    a = jnp.maximum(jnp.dot(mucat, params["assign"]["w"], precision=hp)
                    + params["assign"]["b"], 0.0)
    diff = a[:, None, :] - params["assign"]["centers"][None, :, :]
    norm_sq = jnp.sum(diff * diff, axis=2)
    num = 1.0 / (1.0 + norm_sq / alpha)
    num = num ** (float(alpha + 1.0) / 2.0)
    predict = num / jnp.sum(num, axis=1, keepdims=True)
    return predict, recons, mus, lvs, zs, pi


# ------------------------------------------------------------------------ params

def _xavier_uniform(key, shape):
    fan_in, fan_out = shape
    limit = (6.0 / (fan_in + fan_out)) ** 0.5
    return jax.random.uniform(key, shape, jnp.float32, -limit, limit)


def _dense_params(key, d_in, d_out):
    kw, _ = jax.random.split(key)
    return {"w": _xavier_uniform(kw, (d_in, d_out)),
            "b": jnp.zeros((1, d_out), jnp.float32)}


def init_params(key, num_views, input_dims, h1, h2, h3, latent_dim, num_classes):
    keys = jax.random.split(key, num_views * 9 + 3)
    ki = iter(range(len(keys)))
    views = []
    for v in range(num_views):
        d = input_dims[v]
        views.append({
            "e1": _dense_params(keys[next(ki)], d, h1),
            "e2": _dense_params(keys[next(ki)], h1, h2),
            "e3": _dense_params(keys[next(ki)], h2, h3),
            "mu": _dense_params(keys[next(ki)], h3, latent_dim),
            "lv": _dense_params(keys[next(ki)], h3, latent_dim),
            "d1": _dense_params(keys[next(ki)], latent_dim, h3),
            "d2": _dense_params(keys[next(ki)], h3, h2),
            "d3": _dense_params(keys[next(ki)], h2, h1),
            "out": _dense_params(keys[next(ki)], h1, d),
        })
    rep_dim = latent_dim * num_views
    return {
        "views": views,
        "pi": _dense_params(keys[next(ki)], rep_dim, num_views),
        "assign": {
            **_dense_params(keys[next(ki)], rep_dim, num_classes),
            "centers": _xavier_uniform(keys[next(ki)], (num_classes, rep_dim)),
        },
    }


# -------------------------------------------------------------------------- main

if __name__ == "__main__":
    num_views = 2
    input_dims = (16, 12)
    h1, h2, h3 = 32, 24, 16
    latent_dim = 4
    num_classes = latent_dim * num_views   # required by the literal center broadcast
    batch = 8

    key = jax.random.PRNGKey(0)
    kp, kx0, kx1, ke0, ke1 = jax.random.split(key, 5)

    params = init_params(kp, num_views, input_dims, h1, h2, h3, latent_dim, num_classes)

    batch_inputs = [
        jax.random.normal(kx0, (batch, input_dims[0]), jnp.float32),
        jax.random.normal(kx1, (batch, input_dims[1]), jnp.float32),
    ]
    eps_list = [
        jax.random.normal(ke0, (batch, latent_dim), jnp.float32),
        jax.random.normal(ke1, (batch, latent_dim), jnp.float32),
    ]
    missing_matrix = jnp.ones((batch, num_views), jnp.float32)  # unused in 'assignment'

    predict, recons, mus, log_vars, sample_z, pi = vmvae_clustering_forward(
        params, batch_inputs, missing_matrix, eps_list, clustering_mode="assignment")
    jax.block_until_ready((predict, recons, mus, log_vars, sample_z, pi))

    # Shape / sanity checks.
    assert predict.shape == (batch, num_classes)
    assert pi.shape == (batch, num_views)
    assert all(r.shape == x.shape for r, x in zip(recons, batch_inputs))
    assert all(m.shape == (batch, latent_dim) for m in mus)
    assert all(s.shape == (batch, latent_dim) for s in sample_z)
    assert bool(jnp.allclose(jnp.sum(predict, axis=1), 1.0, atol=1e-5))
    assert bool(jnp.allclose(jnp.sum(pi, axis=1), 1.0, atol=1e-5))
    assert bool(jnp.all(jnp.isfinite(predict)))

    # Cross-check the fused kernel against the unfused pure-JAX reference.
    r_pred, r_rec, r_mu, r_lv, r_z, r_pi = _reference_forward(
        params, batch_inputs, eps_list, alpha=1.0)

    def close(a, b):
        return bool(jnp.allclose(a, b, atol=5e-2, rtol=5e-2))

    assert close(predict, r_pred)
    assert close(pi, r_pi)
    assert all(close(a, b) for a, b in zip(recons, r_rec))
    assert all(close(a, b) for a, b in zip(mus, r_mu))
    assert all(close(a, b) for a, b in zip(log_vars, r_lv))
    assert all(close(a, b) for a, b in zip(sample_z, r_z))

    print("KERNEL_OK")
</pallas_src>

<mosaic_0001>
module attributes {stable_mosaic.version = 11 : i64} {
  func.func @_fused_vmvae_kernel(%arg0: i32, %arg1: memref<8x36xf32, #tpu.memory_space<vmem>>, %arg2: memref<440x128xf32, #tpu.memory_space<vmem>>, %arg3: memref<8x128xf32, #tpu.memory_space<vmem>>) attributes {dimension_semantics = [#tpu.dimension_semantics<parallel>], iteration_bounds = array<i64: 1>, scalar_prefetch = 0 : i64, scratch_operands = 0 : i64, tpu.core_type = #tpu.core_type<tc>, window_params = [{transform_indices = @transform_0, window_bounds = array<i64: 8, 36>}, {pipeline_mode = #tpu.pipeline_mode<synchronous>, transform_indices = @transform_1, window_bounds = array<i64: 440, 128>}, {transform_indices = @transform_2, window_bounds = array<i64: 8, 128>}]} {
    %c0 = arith.constant 0 : index
    %c0_0 = arith.constant 0 : index
    %0 = vector.load %arg1[%c0, %c0_0] : memref<8x36xf32, #tpu.memory_space<vmem>>, vector<8x36xf32>
    %1 = vector.extract_strided_slice %0 {offsets = [0, 0], sizes = [8, 28], strides = [1, 1]} : vector<8x36xf32> to vector<8x28xf32>
    %2 = vector.extract_strided_slice %0 {offsets = [0, 28], sizes = [8, 8], strides = [1, 1]} : vector<8x36xf32> to vector<8x8xf32>
    %c0_1 = arith.constant 0 : index
    %c0_2 = arith.constant 0 : index
    %3 = vector.load %arg2[%c0_1, %c0_2] : memref<440x128xf32, #tpu.memory_space<vmem>>, vector<28x64xf32>
    %cst = arith.constant dense<0.000000e+00> : vector<8x64xf32>
    %4 = tpu.matmul %1, %3, %cst {dimension_numbers = #tpu.dot_dimension_numbers<[1], [0], [0], [1], [0, 0, 1, 1], [], []>} : vector<8x28xf32>, vector<28x64xf32>, vector<8x64xf32> -> vector<8x64xf32>
    %c32 = arith.constant 32 : index
    %c0_3 = arith.constant 0 : index
    %5 = vector.load %arg2[%c32, %c0_3] : memref<440x128xf32, #tpu.memory_space<vmem>>, vector<1x64xf32>
    %6 = vector.broadcast %5 : vector<1x64xf32> to vector<8x64xf32>
    %7 = arith.addf %4, %6 : vector<8x64xf32>
    %cst_4 = arith.constant 0.000000e+00 : f32
    %8 = vector.broadcast %cst_4 : f32 to vector<8x64xf32>
    %9 = arith.maximumf %7, %8 : vector<8x64xf32>
    %c40 = arith.constant 40 : index
    %c0_5 = arith.constant 0 : index
    %10 = vector.load %arg2[%c40, %c0_5] : memref<440x128xf32, #tpu.memory_space<vmem>>, vector<64x48xf32>
    %cst_6 = arith.constant dense<0.000000e+00> : vector<8x48xf32>
    %11 = tpu.matmul %9, %10, %cst_6 {dimension_numbers = #tpu.dot_dimension_numbers<[1], [0], [0], [1], [0, 0, 1, 1], [], []>} : vector<8x64xf32>, vector<64x48xf32>, vector<8x48xf32> -> vector<8x48xf32>
    %c104 = arith.constant 104 : index
    %c0_7 = arith.constant 0 : index
    %12 = vector.load %arg2[%c104, %c0_7] : memref<440x128xf32, #tpu.memory_space<vmem>>, vector<1x48xf32>
    %13 = vector.broadcast %12 : vector<1x48xf32> to vector<8x48xf32>
    %14 = arith.addf %11, %13 : vector<8x48xf32>
    %cst_8 = arith.constant 0.000000e+00 : f32
    %15 = vector.broadcast %cst_8 : f32 to vector<8x48xf32>
    %16 = arith.maximumf %14, %15 : vector<8x48xf32>
    %c112 = arith.constant 112 : index
    %c0_9 = arith.constant 0 : index
    %17 = vector.load %arg2[%c112, %c0_9] : memref<440x128xf32, #tpu.memory_space<vmem>>, vector<48x32xf32>
    %cst_10 = arith.constant dense<0.000000e+00> : vector<8x32xf32>
    %18 = tpu.matmul %16, %17, %cst_10 {dimension_numbers = #tpu.dot_dimension_numbers<[1], [0], [0], [1], [0, 0, 1, 1], [], []>} : vector<8x48xf32>, vector<48x32xf32>, vector<8x32xf32> -> vector<8x32xf32>
    %c160 = arith.constant 160 : index
    %c0_11 = arith.constant 0 : index
    %19 = vector.load %arg2[%c160, %c0_11] : memref<440x128xf32, #tpu.memory_space<vmem>>, vector<1x32xf32>
    %20 = vector.broadcast %19 : vector<1x32xf32> to vector<8x32xf32>
    %21 = arith.addf %18, %20 : vector<8x32xf32>
    %cst_12 = arith.constant 0.000000e+00 : f32
    %22 = vector.broadcast %cst_12 : f32 to vector<8x32xf32>
    %23 = arith.maximumf %21, %22 : vector<8x32xf32>
    %c168 = arith.constant 168 : index
    %c0_13 = arith.constant 0 : index
    %24 = vector.load %arg2[%c168, %c0_13] : memref<440x128xf32, #tpu.memory_space<vmem>>, vector<32x16xf32>
    %cst_14 = arith.constant dense<0.000000e+00> : vector<8x16xf32>
    %25 = tpu.matmul %23, %24, %cst_14 {dimension_numbers = #tpu.dot_dimension_numbers<[1], [0], [0], [1], [0, 0, 1, 1], [], []>} : vector<8x32xf32>, vector<32x16xf32>, vector<8x16xf32> -> vector<8x16xf32>
    %c200 = arith.constant 200 : index
    %c0_15 = arith.constant 0 : index
    %26 = vector.load %arg2[%c200, %c0_15] : memref<440x128xf32, #tpu.memory_space<vmem>>, vector<1x16xf32>
    %27 = vector.broadcast %26 : vector<1x16xf32> to vector<8x16xf32>
    %28 = arith.addf %25, %27 : vector<8x16xf32>
    %29 = vector.extract_strided_slice %28 {offsets = [0, 0], sizes = [8, 8], strides = [1, 1]} : vector<8x16xf32> to vector<8x8xf32>
    %30 = vector.extract_strided_slice %28 {offsets = [0, 8], sizes = [8, 8], strides = [1, 1]} : vector<8x16xf32> to vector<8x8xf32>
    %cst_16 = arith.constant 5.000000e-01 : f32
    %31 = vector.broadcast %cst_16 : f32 to vector<8x8xf32>
    %32 = arith.mulf %31, %30 : vector<8x8xf32>
    %33 = math.exp %32 : vector<8x8xf32>
    %34 = arith.mulf %33, %2 : vector<8x8xf32>
    %35 = arith.addf %29, %34 : vector<8x8xf32>
    %c208 = arith.constant 208 : index
    %c0_17 = arith.constant 0 : index
    %36 = vector.load %arg2[%c208, %c0_17] : memref<440x128xf32, #tpu.memory_space<vmem>>, vector<8x32xf32>
    %cst_18 = arith.constant dense<0.000000e+00> : vector<8x32xf32>
    %37 = tpu.matmul %35, %36, %cst_18 {dimension_numbers = #tpu.dot_dimension_numbers<[1], [0], [0], [1], [0, 0, 1, 1], [], []>} : vector<8x8xf32>, vector<8x32xf32>, vector<8x32xf32> -> vector<8x32xf32>
    %c216 = arith.constant 216 : index
    %c0_19 = arith.constant 0 : index
    %38 = vector.load %arg2[%c216, %c0_19] : memref<440x128xf32, #tpu.memory_space<vmem>>, vector<1x32xf32>
    %39 = vector.broadcast %38 : vector<1x32xf32> to vector<8x32xf32>
    %40 = arith.addf %37, %39 : vector<8x32xf32>
    %cst_20 = arith.constant 0.000000e+00 : f32
    %41 = vector.broadcast %cst_20 : f32 to vector<8x32xf32>
    %42 = arith.maximumf %40, %41 : vector<8x32xf32>
    %c224 = arith.constant 224 : index
    %c0_21 = arith.constant 0 : index
    %43 = vector.load %arg2[%c224, %c0_21] : memref<440x128xf32, #tpu.memory_space<vmem>>, vector<32x48xf32>
    %cst_22 = arith.constant dense<0.000000e+00> : vector<8x48xf32>
    %44 = tpu.matmul %42, %43, %cst_22 {dimension_numbers = #tpu.dot_dimension_numbers<[1], [0], [0], [1], [0, 0, 1, 1], [], []>} : vector<8x32xf32>, vector<32x48xf32>, vector<8x48xf32> -> vector<8x48xf32>
    %c256 = arith.constant 256 : index
    %c0_23 = arith.constant 0 : index
    %45 = vector.load %arg2[%c256, %c0_23] : memref<440x128xf32, #tpu.memory_space<vmem>>, vector<1x48xf32>
    %46 = vector.broadcast %45 : vector<1x48xf32> to vector<8x48xf32>
    %47 = arith.addf %44, %46 : vector<8x48xf32>
    %cst_24 = arith.constant 0.000000e+00 : f32
    %48 = vector.broadcast %cst_24 : f32 to vector<8x48xf32>
    %49 = arith.maximumf %47, %48 : vector<8x48xf32>
    %c264 = arith.constant 264 : index
    %c0_25 = arith.constant 0 : index
    %50 = vector.load %arg2[%c264, %c0_25] : memref<440x128xf32, #tpu.memory_space<vmem>>, vector<48x64xf32>
    %cst_26 = arith.constant dense<0.000000e+00> : vector<8x64xf32>
    %51 = tpu.matmul %49, %50, %cst_26 {dimension_numbers = #tpu.dot_dimension_numbers<[1], [0], [0], [1], [0, 0, 1, 1], [], []>} : vector<8x48xf32>, vector<48x64xf32>, vector<8x64xf32> -> vector<8x64xf32>
    %c312 = arith.constant 312 : index
    %c0_27 = arith.constant 0 : index
    %52 = vector.load %arg2[%c312, %c0_27] : memref<440x128xf32, #tpu.memory_space<vmem>>, vector<1x64xf32>
    %53 = vector.broadcast %52 : vector<1x64xf32> to vector<8x64xf32>
    %54 = arith.addf %51, %53 : vector<8x64xf32>
    %cst_28 = arith.constant 0.000000e+00 : f32
    %55 = vector.broadcast %cst_28 : f32 to vector<8x64xf32>
    %56 = arith.maximumf %54, %55 : vector<8x64xf32>
    %c320 = arith.constant 320 : index
    %c0_29 = arith.constant 0 : index
    %57 = vector.load %arg2[%c320, %c0_29] : memref<440x128xf32, #tpu.memory_space<vmem>>, vector<64x28xf32>
    %cst_30 = arith.constant dense<0.000000e+00> : vector<8x28xf32>
    %58 = tpu.matmul %56, %57, %cst_30 {dimension_numbers = #tpu.dot_dimension_numbers<[1], [0], [0], [1], [0, 0, 1, 1], [], []>} : vector<8x64xf32>, vector<64x28xf32>, vector<8x28xf32> -> vector<8x28xf32>
    %c384 = arith.constant 384 : index
    %c0_31 = arith.constant 0 : index
    %59 = vector.load %arg2[%c384, %c0_31] : memref<440x128xf32, #tpu.memory_space<vmem>>, vector<1x28xf32>
    %60 = vector.broadcast %59 : vector<1x28xf32> to vector<8x28xf32>
    %61 = arith.addf %58, %60 : vector<8x28xf32>
    %62 = arith.negf %61 : vector<8x28xf32>
    %63 = math.exp %62 : vector<8x28xf32>
    %cst_32 = arith.constant 1.000000e+00 : f32
    %64 = vector.broadcast %cst_32 : f32 to vector<8x28xf32>
    %65 = arith.addf %64, %63 : vector<8x28xf32>
    %66 = arith.divf %64, %65 : vector<8x28xf32>
    %c392 = arith.constant 392 : index
    %c0_33 = arith.constant 0 : index
    %67 = vector.load %arg2[%c392, %c0_33] : memref<440x128xf32, #tpu.memory_space<vmem>>, vector<8x2xf32>
    %cst_34 = arith.constant dense<0.000000e+00> : vector<8x2xf32>
    %68 = tpu.matmul %35, %67, %cst_34 {dimension_numbers = #tpu.dot_dimension_numbers<[1], [0], [0], [1], [0, 0, 1, 1], [], []>} : vector<8x8xf32>, vector<8x2xf32>, vector<8x2xf32> -> vector<8x2xf32>
    %c400 = arith.constant 400 : index
    %c0_35 = arith.constant 0 : index
    %69 = vector.load %arg2[%c400, %c0_35] : memref<440x128xf32, #tpu.memory_space<vmem>>, vector<1x2xf32>
    %70 = vector.broadcast %69 : vector<1x2xf32> to vector<8x2xf32>
    %71 = arith.addf %68, %70 : vector<8x2xf32>
    %cst_36 = arith.constant dense<0xFF800000> : vector<8xf32>
    %72 = vector.multi_reduction <maximumf>, %71, %cst_36 [1] : vector<8x2xf32> to vector<8xf32>
    %73 = vector.shape_cast %72 : vector<8xf32> to vector<8x1xf32>
    %74 = vector.broadcast %73 : vector<8x1xf32> to vector<8x2xf32>
    %75 = arith.subf %71, %74 : vector<8x2xf32>
    %76 = math.exp %75 : vector<8x2xf32>
    %cst_37 = arith.constant dense<0.000000e+00> : vector<8xf32>
    %77 = vector.multi_reduction <add>, %76, %cst_37 [1] : vector<8x2xf32> to vector<8xf32>
    %78 = vector.shape_cast %77 : vector<8xf32> to vector<8x1xf32>
    %79 = vector.broadcast %78 : vector<8x1xf32> to vector<8x2xf32>
    %80 = arith.divf %76, %79 : vector<8x2xf32>
    %c408 = arith.constant 408 : index
    %c0_38 = arith.constant 0 : index
    %81 = vector.load %arg2[%c408, %c0_38] : memref<440x128xf32, #tpu.memory_space<vmem>>, vector<8x8xf32>
    %cst_39 = arith.constant dense<0.000000e+00> : vector<8x8xf32>
    %82 = tpu.matmul %29, %81, %cst_39 {dimension_numbers = #tpu.dot_dimension_numbers<[1], [0], [0], [1], [0, 0, 1, 1], [], []>} : vector<8x8xf32>, vector<8x8xf32>, vector<8x8xf32> -> vector<8x8xf32>
    %c416 = arith.constant 416 : index
    %c0_40 = arith.constant 0 : index
    %83 = vector.load %arg2[%c416, %c0_40] : memref<440x128xf32, #tpu.memory_space<vmem>>, vector<1x8xf32>
    %84 = vector.broadcast %83 : vector<1x8xf32> to vector<8x8xf32>
    %85 = arith.addf %82, %84 : vector<8x8xf32>
    %cst_41 = arith.constant 0.000000e+00 : f32
    %86 = vector.broadcast %cst_41 : f32 to vector<8x8xf32>
    %87 = arith.maximumf %85, %86 : vector<8x8xf32>
    %c424 = arith.constant 424 : index
    %c0_42 = arith.constant 0 : index
    %88 = vector.load %arg2[%c424, %c0_42] : memref<440x128xf32, #tpu.memory_space<vmem>>, vector<8x8xf32>
    %89 = arith.mulf %87, %87 : vector<8x8xf32>
    %cst_43 = arith.constant dense<0.000000e+00> : vector<8xf32>
    %90 = vector.multi_reduction <add>, %89, %cst_43 [1] : vector<8x8xf32> to vector<8xf32>
    %91 = vector.shape_cast %90 : vector<8xf32> to vector<8x1xf32>
    %cst_44 = arith.constant dense<0.000000e+00> : vector<8x8xf32>
    %92 = tpu.matmul %87, %88, %cst_44 {dimension_numbers = #tpu.dot_dimension_numbers<[1], [1], [0], [0], [0, 0, 1, 0], [], []>} : vector<8x8xf32>, vector<8x8xf32>, vector<8x8xf32> -> vector<8x8xf32>
    %c432 = arith.constant 432 : index
    %c0_45 = arith.constant 0 : index
    %93 = vector.load %arg2[%c432, %c0_45] : memref<440x128xf32, #tpu.memory_space<vmem>>, vector<1x8xf32>
    %94 = vector.broadcast %91 : vector<8x1xf32> to vector<8x8xf32>
    %95 = vector.broadcast %93 : vector<1x8xf32> to vector<8x8xf32>
    %96 = arith.addf %94, %95 : vector<8x8xf32>
    %cst_46 = arith.constant 2.000000e+00 : f32
    %97 = vector.broadcast %cst_46 : f32 to vector<8x8xf32>
    %98 = arith.mulf %97, %92 : vector<8x8xf32>
    %99 = arith.subf %96, %98 : vector<8x8xf32>
    %cst_47 = arith.constant 0.000000e+00 : f32
    %100 = vector.broadcast %cst_47 : f32 to vector<8x8xf32>
    %101 = arith.maximumf %99, %100 : vector<8x8xf32>
    %cst_48 = arith.constant 1.000000e+00 : f32
    %102 = vector.broadcast %cst_48 : f32 to vector<8x8xf32>
    %103 = arith.divf %101, %102 : vector<8x8xf32>
    %cst_49 = arith.constant 1.000000e+00 : f32
    %104 = vector.broadcast %cst_49 : f32 to vector<8x8xf32>
    %105 = arith.addf %104, %103 : vector<8x8xf32>
    %cst_50 = arith.constant 1.000000e+00 : f32
    %106 = vector.broadcast %cst_50 : f32 to vector<8x8xf32>
    %107 = arith.divf %106, %105 : vector<8x8xf32>
    %cst_51 = arith.constant dense<0.000000e+00> : vector<8xf32>
    %108 = vector.multi_reduction <add>, %107, %cst_51 [1] : vector<8x8xf32> to vector<8xf32>
    %109 = vector.shape_cast %108 : vector<8xf32> to vector<8x1xf32>
    %110 = vector.broadcast %109 : vector<8x1xf32> to vector<8x8xf32>
    %111 = arith.divf %107, %110 : vector<8x8xf32>
    %cst_52 = arith.constant 0.000000e+00 : f32
    %112 = vector.broadcast %cst_52 : f32 to vector<8x66xf32>
    %113 = tpu.concatenate %66, %29, %30, %35, %80, %111, %112 in 1 : vector<8x28xf32>, vector<8x8xf32>, vector<8x8xf32>, vector<8x8xf32>, vector<8x2xf32>, vector<8x8xf32>, vector<8x66xf32> -> vector<8x128xf32>
    %c0_53 = arith.constant 0 : index
    %c0_54 = arith.constant 0 : index
    %114 = vector.load %arg3[%c0_53, %c0_54] : memref<8x128xf32, #tpu.memory_space<vmem>>, vector<8x128xf32>
    tpu.vector_store %arg3[%c0_53, %c0_54], %113 {strides = array<i32>} : memref<8x128xf32, #tpu.memory_space<vmem>>, vector<8x128xf32>,
    return
  }
  func.func @transform_0(%arg0: i32) -> (i32, i32) {
    %c0_i32 = arith.constant 0 : i32
    %c0_i32_0 = arith.constant 0 : i32
    return %arg0, %c0_i32 : i32, i32
  }
  func.func @transform_1(%arg0: i32) -> (i32, i32) {
    %c0_i32 = arith.constant 0 : i32
    %c0_i32_0 = arith.constant 0 : i32
    %c0_i32_1 = arith.constant 0 : i32
    return %c0_i32, %c0_i32_0 : i32, i32
  }
  func.func @transform_2(%arg0: i32) -> (i32, i32) {
    %c0_i32 = arith.constant 0 : i32
    %c0_i32_0 = arith.constant 0 : i32
    return %arg0, %c0_i32 : i32, i32
  }
}

</mosaic_0001>

<bundles_post_ra>
// kernel: tpu_custom_call.1
= control target key start
LH: loop header
LB: loop body
LE: loop exit
PB: predicated region body
PF: predicated region fallthrough
CT: control target
= control target key end

     0   :  { %7 = vsyncpa [#allocation3], 0  ;;  %s1472_s0 = inlined_call_operand.hbm [shape: f32[8,36], index: 0, kind: input, shape index: {}]   ;;  %s1473_s1 = inlined_call_operand.hbm [shape: f32[440,128], index: 1, kind: input, shape index: {}]   ;;  %s1474_s2 = inlined_call_operand.hbm [shape: f32[8,128], index: 2, kind: output, shape index: {}]  }
   0x1   :  { %8 = vsyncpa [#allocation6], 0 }
   0x2   :  { %9 = vsyncpa [#allocation4], 0  ;;  %s1339_s9 = smov [#allocation2]   ;;  %s1340_s11 = smov [#allocation5]  }
   0x3   :  { %s16_s10 = sshll.u32 %s1339_s9, 4  ;;  %s25_s12 = sshll.u32 %s1340_s11, 4  ;;  %s17_s10 = int_to_ptr.vmem [resolvable:$true] %s16_s10  ;;  %s26_s12 = int_to_ptr.vmem [resolvable:$true] %s25_s12 }
   0x4   :  { %s1281_s13 = scalar_lea.vmem %s17_s10, 128  ;;  %p1286_p1 = scmp.lt.s32.totalorder %s17_s10, %s17_s10 }
   0x5   :  { %p1282_p0 = scmp.ne.s32.totalorder %s17_s10, %s1281_s13  ;;  %p1287_p2 = scmp.lt.s32.totalorder %s1281_s13, %s1281_s13 }
   0x7   :  { %p1288_p3 = por %p1287_p2, %p1286_p1 }
   0x9   :  { %p1289_p4 = pnand %p1288_p3, %p1282_p0 }
   0xb   :  { %1292 = shalt.err (!%p1289_p4)
}
   0xc   :  { %19 = dma.hbm_to_vmem [thread:$0]  %s1472_s0, 128, %s17_s10, [#allocation3]  }
   0xd   :  { %s1301_s16 = scalar_lea.vmem %s26_s12, 7040  ;;  %p1306_p6 = scmp.lt.s32.totalorder %s26_s12, %s26_s12 }
   0xe   :  { %p1302_p5 = scmp.ne.s32.totalorder %s26_s12, %s1301_s16  ;;  %p1307_p7 = scmp.lt.s32.totalorder %s1301_s16, %s1301_s16 }
  0x10   :  { %p1308_p8 = por %p1307_p7, %p1306_p6 }
  0x12   :  { %p1309_p9 = pnand %p1308_p8, %p1302_p5 }
  0x14   :  { %1312 = shalt.err (!%p1309_p9)
}
  0x15   :  { %s1341_s17 = smov 128   ;;  %s1342_s18 = smov 8  }
  0x16   :  { %31 = dma.hbm_to_vmem [thread:$0]  %s1473_s1, 7040, %s26_s12, [#allocation6], %s1341_s17, %s1341_s17, %s1342_s18  }
  0x17   :  { %1333 = dma.done.wait [#allocation3], 128  }
  0x18   :  { %1334 = vsyncadd [#allocation3], 4294967168 }
  0x19   :  { %1335 = dma.done.wait [#allocation6], 7040  }
  0x1a   :  { %1336 = vsyncadd [#allocation6], 4294960256  ;;  %v1343_v0 = vmov 0.0   ;;  %vm1344_vm0 = vmmov 0   ;;  %vm52_vm1 = vcmask 1043456   ;;  %v41_v2 = vld [vmem:[#allocation5 + $0x10] sm:$0xff] }
  0x1b   :  { %1125 = vmatprep.subr.mxu0 %v1343_v0  ;;  %1133 = vmatprep.mubr.msk.f32.mxu0 %vm1344_vm0, %v1343_v0  ;;  %v42_v1 = vld [vmem:[#allocation5 + $0x18] sm:$0xf]  ;;  %v134_v3 = vld [vmem:[#allocation5 + $0x60] sm:$0xff]  ;;  %v40_v4 = vld [vmem:[#allocation5 + $0x8] sm:$0xff]  ;;  %vm48_vm2 = vcmask 228352   ;;  %vm140_vm3 = vcmask 523264  }
  0x1c   :  { %1136 = vmatprep.subr.mxu1 %v1343_v0  ;;  %1152 = vmatprep.mubr.msk.f32.mxu1 %vm1344_vm0, %v1343_v0  ;;  %v133_v5 = vld [vmem:[#allocation5 + $0x58] sm:$0xff]  ;;  %v132_v6 = vld [vmem:[#allocation5 + $0x50] sm:$0xff]  ;;  %v39_v7 = vld [vmem:[#allocation5] sm:$0xff]  ;;  %vm226_vm4 = vcmask 392192   ;;  %s1345_s0 = smov 108   ;;  %vm310_vm5 = vcmask 261120  }
  0x1d   :  { %1126 = vmatpush3.msk.msra.mxu0 %vm52_vm1, %v42_v1  ;;  %1137 = vmatpush3.msra.mxu1 %v134_v3  ;;  %v1382_v8 = vld [vmem:[#allocation2] sm:$0xff]  ;;  %v131_v9 = vld [vmem:[#allocation5 + $0x48] sm:$0xff]  ;;  %v130_v10 = vld [vmem:[#allocation5 + $0x40] sm:$0xff]  ;;  %s1346_s1 = smov 120   ;;  %vm402_vm6 = vcmask 64512   ;;  %vm813_vm7 = vcmask 15360  }
  0x1e   :  { %1127 = vmatprep.subr.mxu0 %v1343_v0  ;;  %1138 = vmatprep.subr.mxu1 %v1343_v0  ;;  %v129_v11 = vld [vmem:[#allocation5 + $0x38] sm:$0xff]  ;;  %v128_v12 = vld [vmem:[#allocation5 + $0x30] sm:$0xff]  ;;  %v127_v13 = vld [vmem:[#allocation5 + $0x28] sm:$0xff]  ;;  %s1347_s21 = smov 28   ;;  %s1348_s22 = smov 44   ;;  %vm1018_vm8 = vcmask 293888  }
  0x1f   :  { %1128 = vmatpush3.msra.mxu0 %v41_v2  ;;  %1139 = vmatpush3.msra.mxu1 %v133_v5  ;;  %v220_v14 = vld [vmem:[#allocation5 + $0x98] sm:$0xff]  ;;  %v219_v15 = vld [vmem:[#allocation5 + $0x90] sm:$0xff]  ;;  %v218_v16 = vld [vmem:[#allocation5 + $0x88] sm:$0xff]  ;;  %s1349_s23 = smov 52   ;;  %s1350_s24 = smov 54   ;;  %vm1020_vm9 = vcmask 359424  }
  0x20   :  { %1129 = vmatprep.subr.mxu0 %v1343_v0  ;;  %1140 = vmatprep.subr.mxu1 %v1343_v0  ;;  %v1045_v17 = vld [vmem:[#allocation5 + $0x20] ss:$0 sm:$0xff]  ;;  %v216_v23 = vld [vmem:[#allocation5 + $0x78] sm:$0xff]  ;;  %v215_v24 = vld [vmem:[#allocation5 + $0x70] sm:$0xff]  ;;  %vm1022_vm10 = vcmask 424960   ;;  %vm1024_vm11 = vcmask 441344  }
  0x21   :  { %1130 = vmatpush3.msra.mxu0 %v40_v4  ;;  %1141 = vmatpush3.msra.mxu1 %v132_v6  ;;  %v217_v22 = vld [vmem:[#allocation5 + $0x80] sm:$0xff]  ;;  %v1048_v26 = vld [vmem:[#allocation5 + $0x68] ss:$0 sm:$0xff]  ;;  %v303_v31 = vld [vmem:[#allocation5 + $0xb8] sm:$0xff]  ;;  %s1351_s25 = smov [#allocation7]   ;;  %vm1026_vm12 = vcmask 506880  }
  0x22   :  { %1131 = vmatprep.subr.mxu0 %v1343_v0  ;;  %1142 = vmatprep.subr.mxu1 %v1343_v0  ;;  %v304_v25 = vld [vmem:[#allocation5 + $0xc0] sm:$0xff]  ;;  %v302_v32 = vld [vmem:[#allocation5 + $0xb0] sm:$0xff]  ;;  %v301_v33 = vld [vmem:[#allocation5 + $0xa8] sm:$0xff]  ;;  %s1035_s26 = sshll.u32 %s1351_s25, 4  ;;  %s1036_s26 = int_to_ptr.vmem [resolvable:$true] %s1035_s26 }
  0x23   :  { %1132 = vmatpush3.msra.mxu0 %v39_v7  ;;  %1143 = vmatpush3.msra.mxu1 %v131_v9  ;;  %v1050_v34 = vld [vmem:[#allocation5 + $0xa0] ss:$0 sm:$0xff]  ;;  %v396_v39 = vld [vmem:[#allocation5 + $0xd0] sm:$0xff]  ;;  %v1052_v40 = vld [vmem:[#allocation5 + $0xc8] ss:$0 sm:$0xff]  ;;  %s1313_s27 = scalar_lea.vmem %s1036_s26, 128  ;;  %p1318_p11 = scmp.lt.s32.totalorder %s1036_s26, %s1036_s26 }
  0x24   :  { %1134 = vmatmul.mubr.msk.f32.vlgmr.msra.gmra.mxu0 %vm48_vm2, %v1382_v8  ;;  %1144 = vmatprep.subr.mxu1 %v1343_v0  ;;  %v480_v51 = vld [vmem:[#allocation5 + $0xf8] sm:$0xff]  ;;  %v479_v52 = vld [vmem:[#allocation5 + $0xf0] sm:$0xff]  ;;  %v478_v53 = vld [vmem:[#allocation5 + $0xe8] sm:$0xff]  ;;  %p1314_p10 = scmp.ne.s32.totalorder %s1036_s26, %s1313_s27  ;;  %p1319_p12 = scmp.lt.s32.totalorder %s1313_s27, %s1313_s27 }
  0x25   :  { %1155 = vmatprep.subr.mxu0 %v1343_v0  ;;  %1145 = vmatpush3.msra.mxu1 %v130_v10  ;;  %v477_v54 = vld [vmem:[#allocation5 + $0xe0] sm:$0xff]  ;;  %v565_v55 = vld [vmem:[#allocation5 + $0x130] sm:$0xff]  ;;  %v564_v56 = vld [vmem:[#allocation5 + $0x128] sm:$0xff] }
  0x26   :  { %1167 = vmatprep.mubr.msk.f32.mxu0 %vm1344_vm0, %v1343_v0  ;;  %1146 = vmatprep.subr.mxu1 %v1343_v0  ;;  %v563_v57 = vld [vmem:[#allocation5 + $0x120] sm:$0xff]  ;;  %v562_v58 = vld [vmem:[#allocation5 + $0x118] sm:$0xff]  ;;  %v561_v1 = vld [vmem:[#allocation5 + $0x110] sm:$0xff]  ;;  %p1320_p13 = por %p1319_p12, %p1318_p11 }
  0x27   :  { %1147 = vmatpush3.msra.mxu1 %v129_v11  ;;  %1156 = vmatpush3.msra.mxu0 %v220_v14  ;;  %v1054_v59 = vld [vmem:[#allocation5 + $0xd8] ss:$0 sm:$0xff]  ;;  %v560_v2 = vld [vmem:[#allocation5 + $0x108] sm:$0xff]  ;;  %v651_v4 = vld [vmem:[#allocation5 + $0x170] sm:$0xff] }
  0x28   :  { %1148 = vmatprep.subr.mxu1 %v1343_v0  ;;  %1157 = vmatprep.subr.mxu0 %v1343_v0  ;;  %v652_v3 = vld [vmem:[#allocation5 + $0x178] sm:$0xff]  ;;  %v650_v5 = vld [vmem:[#allocation5 + $0x168] sm:$0xff]  ;;  %v649_v6 = vld [vmem:[#allocation5 + $0x160] sm:$0xff]  ;;  %p1321_p0 = pnand %p1320_p13, %p1314_p10 }
  0x29   :  { %1149 = vmatpush3.msra.mxu1 %v128_v12  ;;  %1158 = vmatpush3.msra.mxu0 %v219_v15  ;;  %v648_v7 = vld [vmem:[#allocation5 + $0x158] sm:$0xff]  ;;  %v647_v15 = vld [vmem:[#allocation5 + $0x150] sm:$0xff] }
  0x2a   :  { %1150 = vmatprep.subr.mxu1 %v1343_v0  ;;  %1159 = vmatprep.subr.mxu0 %v1343_v0  ;;  %v825_v14 = vld [vmem:[#allocation5 + $0x198] sm:$0xff] }
  0x2b   :  { %1151 = vmatpush3.msra.mxu1 %v127_v13  ;;  %1160 = vmatpush3.msra.mxu0 %v218_v16  ;;  %v737_v13 = vld [vmem:[#allocation5 + $0x188] sm:$0xff] }
  0x2c   :  { %1170 = vmatprep.subr.mxu1 %v1343_v0  ;;  %1161 = vmatprep.subr.mxu0 %v1343_v0  ;;  %v646_v16 = vld [vmem:[#allocation5 + $0x148] sm:$0xff] }
  0x2d   :  { %1162 = vmatpush3.msra.mxu0 %v217_v22  ;;  %387 = vrot.lane.b32.xlu0 %v1382_v8, %s1345_s0  ;;  %v1056_v8 = vld [vmem:[#allocation5 + $0x100] ss:$0 sm:$0xff] }
  0x2e   :  { %1163 = vmatprep.subr.mxu0 %v1343_v0 }
  0x2f   :  { %1164 = vmatpush3.msra.mxu0 %v216_v23 }
  0x30   :  { %1165 = vmatprep.subr.mxu0 %v1343_v0 }
  0x31   :  { %1166 = vmatpush3.msra.mxu0 %v215_v24 }
  0x32   :  { %1181 = vmatprep.subr.mxu0 %v1343_v0 }
  0x9f   :  { %v388_v46 = vpop.permute.xlu0 %387 }
  0xe4   :  { %v122_v18 = vpop.f32.mrf.mxu0 }
  0xe5   :  { %v123_v19 = vadd.f32 %v1045_v17, %v122_v18  ;;  %v645_v17 = vld [vmem:[#allocation5 + $0x140] sm:$0xff]  ;;  %v905_v18 = vld [vmem:[#allocation5 + $0x1a8] sm:$0xff] }
  0xe6   :  { %v1135_v20 = vpop.f32.mrf.mxu0 }
  0xe7   :  { %v126_v21 = vmax.f32 %v123_v19, 0.0  ;;  %v1058_v19 = vld [vmem:[#allocation5 + $0x138] ss:$0 sm:$0xff] }
  0xe9   :  { %1153 = vmatmul.mubr.msk.f32.vlgmr.msra.gmra.mxu1 %vm140_vm3, %v126_v21 }
  0xea   :  { %1178 = vmatprep.mubr.msk.f32.mxu1 %vm1344_vm0, %v1343_v0  ;;  %1171 = vmatpush3.msra.mxu1 %v304_v25 }
  0xeb   :  { %1172 = vmatprep.subr.mxu1 %v1343_v0 }
  0xec   :  { %1173 = vmatpush3.msra.mxu1 %v303_v31 }
  0xed   :  { %1174 = vmatprep.subr.mxu1 %v1343_v0 }
  0xee   :  { %1175 = vmatpush3.msra.mxu1 %v302_v32 }
  0xef   :  { %1176 = vmatprep.subr.mxu1 %v1343_v0 }
  0xf0   :  { %1177 = vmatpush3.msra.mxu1 %v301_v33 }
  0xf1   :  { %1197 = vmatprep.subr.mxu1 %v1343_v0 }
 0x1a9   :  { %v210_v27 = vpop.f32.mrf.mxu1 }
 0x1aa   :  { %v211_v28 = vadd.f32 %v1048_v26, %v210_v27  ;;  %v1065_v26 = vld [vmem:[#allocation5 + $0x1a0] ss:$0 sm:$0xff] }
 0x1ab   :  { %v1154_v29 = vpop.f32.mrf.mxu1 }
 0x1ac   :  { %v214_v30 = vmax.f32 %v211_v28, 0.0 }
 0x1ae   :  { %1168 = vmatmul.mubr.msk.f32.vlgmr.msra.gmra.mxu0 %vm226_vm4, %v214_v30 }
 0x1af   :  { %1183 = vmatprep.mubr.msk.f32.mxu0 %vm1344_vm0, %v1343_v0  ;;  %1182 = vmatpush3.msra.mxu0 %v396_v39 }
 0x1b0   :  { %1186 = vmatprep.subr.mxu0 %v1343_v0 }
 0x26e   :  { %v296_v35 = vpop.f32.mrf.mxu0 }
 0x26f   :  { %v297_v36 = vadd.f32 %v1050_v34, %v296_v35 }
 0x270   :  { %v1169_v37 = vpop.f32.mrf.mxu0 }
 0x271   :  { %v300_v38 = vmax.f32 %v297_v36, 0.0 }
 0x273   :  { %1179 = vmatmul.mubr.msk.f32.vlgmr.msra.gmra.mxu1 %vm310_vm5, %v300_v38 }
 0x274   :  { %1209 = vmatprep.mubr.msk.f32.mxu1 %vm1344_vm0, %v1343_v0  ;;  %1198 = vmatpush3.msra.mxu1 %v565_v55 }
 0x275   :  { %1199 = vmatprep.subr.mxu1 %v1343_v0 }
 0x276   :  { %1200 = vmatpush3.msra.mxu1 %v564_v56 }
 0x277   :  { %1201 = vmatprep.subr.mxu1 %v1343_v0 }
 0x278   :  { %1202 = vmatpush3.msra.mxu1 %v563_v57 }
 0x279   :  { %1203 = vmatprep.subr.mxu1 %v1343_v0 }
 0x27a   :  { %1204 = vmatpush3.msra.mxu1 %v562_v58 }
 0x27b   :  { %1205 = vmatprep.subr.mxu1 %v1343_v0 }
 0x27c   :  { %1206 = vmatpush3.msra.mxu1 %v561_v1 }
 0x27d   :  { %1207 = vmatprep.subr.mxu1 %v1343_v0 }
 0x27e   :  { %1208 = vmatpush3.msra.mxu1 %v560_v2 }
 0x27f   :  { %1231 = vmatprep.subr.mxu1 %v1343_v0 }
 0x333   :  { %v380_v41 = vpop.f32.mrf.mxu1 }
 0x334   :  { %v1418_v42 = vadd.f32 %v1052_v40, %v380_v41 }
 0x335   :  { %v1180_v43 = vpop.f32.mrf.mxu1 }
 0x336   :  { %v384_v44 = vmul.f32 0.5, %v1418_v42 }
 0x338   :  { %v385_v45 = vmul.f32 1.442695, %v384_v44  ;;  %v1069_v44 = vld [vmem:[#allocation5 + $0x1b0] ss:$0 sm:$0xff] }
 0x33a   :  { %1259 = vpow2.f32 %v385_v45 }
 0x347   :  { %v1260_v47 = vpop.eup %1259 }
 0x348   :  { %v390_v48 = vmul.f32 %v1260_v47, %v388_v46 }
 0x34a   :  { %392 = vrot.lane.b32.xlu0 %v390_v48, %s1346_s1 }
 0x3bc   :  { %v393_v49 = vpop.permute.xlu0 %392 }
 0x3bd   :  { %v1422_v50 = vadd.f32 %v393_v49, %v1418_v42 }
 0x3bf   :  { %1184 = vmatmul.mubr.msk.f32.vlgmr.msra.gmra.mxu0 %vm402_vm6, %v1422_v50 }
 0x3c0   :  { %1187 = vmatpush3.msra.mxu0 %v480_v51  ;;  %1194 = vmatprep.mubr.msk.f32.mxu0 %vm1344_vm0, %v1343_v0 }
 0x3c1   :  { %1188 = vmatprep.subr.mxu0 %v1343_v0 }
 0x3c2   :  { %1189 = vmatpush3.msra.mxu0 %v479_v52 }
 0x3c3   :  { %1190 = vmatprep.subr.mxu0 %v1343_v0 }
 0x3c4   :  { %1191 = vmatpush3.msra.mxu0 %v478_v53 }
 0x3c5   :  { %1192 = vmatprep.subr.mxu0 %v1343_v0 }
 0x3c6   :  { %1193 = vmatpush3.msra.mxu0 %v477_v54 }
 0x3c7   :  { %1212 = vmatprep.subr.mxu0 %v1343_v0 }
 0x47f   :  { %v472_v60 = vpop.f32.mrf.mxu0 }
 0x480   :  { %v473_v61 = vadd.f32 %v1054_v59, %v472_v60 }
 0x481   :  { %v1185_v62 = vpop.f32.mrf.mxu0 }
 0x482   :  { %v476_v63 = vmax.f32 %v473_v61, 0.0  ;;  %v1060_v61 = vld [vmem:[#allocation5 + $0x180] ss:$0 sm:$0xff] }
 0x484   :  { %1195 = vmatmul.mubr.msk.f32.vlgmr.msra.gmra.mxu0 %vm310_vm5, %v476_v63 }
 0x485   :  { %1228 = vmatprep.mubr.msk.f32.mxu0 %vm1344_vm0, %v1343_v0  ;;  %1213 = vmatpush3.msra.mxu0 %v652_v3 }
 0x486   :  { %1214 = vmatprep.subr.mxu0 %v1343_v0 }
 0x487   :  { %1215 = vmatpush3.msra.mxu0 %v651_v4 }
 0x488   :  { %1216 = vmatprep.subr.mxu0 %v1343_v0 }
 0x489   :  { %1217 = vmatpush3.msra.mxu0 %v650_v5 }
 0x48a   :  { %1218 = vmatprep.subr.mxu0 %v1343_v0 }
 0x48b   :  { %1219 = vmatpush3.msra.mxu0 %v649_v6 }
 0x48c   :  { %1220 = vmatprep.subr.mxu0 %v1343_v0 }
 0x48d   :  { %1221 = vmatpush3.msra.mxu0 %v648_v7 }
 0x48e   :  { %1222 = vmatprep.subr.mxu0 %v1343_v0 }
 0x48f   :  { %1223 = vmatpush3.msra.mxu0 %v647_v15 }
 0x490   :  { %1224 = vmatprep.subr.mxu0 %v1343_v0 }
 0x491   :  { %1225 = vmatpush3.msra.mxu0 %v646_v16 }
 0x492   :  { %1226 = vmatprep.subr.mxu0 %v1343_v0 }
 0x493   :  { %1227 = vmatpush3.msra.mxu0 %v645_v17 }
 0x544   :  { %v555_v9 = vpop.f32.mrf.mxu0 }
 0x545   :  { %v556_v10 = vadd.f32 %v1056_v8, %v555_v9 }
 0x546   :  { %v1196_v11 = vpop.f32.mrf.mxu0 }
 0x547   :  { %v559_v12 = vmax.f32 %v556_v10, 0.0 }
 0x549   :  { %1210 = vmatmul.mubr.msk.f32.vlgmr.msra.gmra.mxu1 %vm226_vm4, %v559_v12 }
 0x54a   :  { %1232 = vmatpush3.msra.mxu1 %v737_v13  ;;  %1233 = vmatprep.mubr.msk.f32.mxu1 %vm1344_vm0, %v1343_v0 }
 0x54b   :  { %1236 = vmatprep.subr.mxu1 %v1343_v0 }
 0x54d   :  { %1234 = vmatmul.mubr.msk.f32.vlgmr.msra.gmra.mxu1 %vm402_vm6, %v1422_v50 }
 0x54e   :  { %1237 = vmatpush3.msra.mxu1 %v825_v14  ;;  %1238 = vmatprep.mubr.msk.f32.mxu1 %vm1344_vm0, %v1343_v0 }
 0x54f   :  { %1241 = vmatprep.subr.mxu1 %v1343_v0 }
 0x551   :  { %1239 = vmatmul.mubr.msk.f32.vlgmr.msra.gmra.mxu1 %vm402_vm6, %v1418_v42 }
 0x552   :  { %1243 = vmatprep.mubr.msk.f32.mxu1 %vm1344_vm0, %v1343_v0  ;;  %1242 = vmatpush3.xpose.msk.msra.mxu1 %vm402_vm6, %v905_v18  ;;  %v1063_v0 = vld [vmem:[#allocation5 + $0x190] ss:$0 sm:$0xff] }
 0x609   :  { %v640_v20 = vpop.f32.mrf.mxu1 }
 0x60a   :  { %v641_v21 = vadd.f32 %v1058_v19, %v640_v20 }
 0x60b   :  { %v1211_v22 = vpop.f32.mrf.mxu1 }
 0x60c   :  { %v644_v23 = vmax.f32 %v641_v21, 0.0 }
 0x60d   :  { %v809_v24 = vpop.f32.mrf.mxu1 }
 0x60e   :  { %1229 = vmatmul.mubr.msk.f32.vlgmr.msra.gmra.mxu0 %vm140_vm3, %v644_v23  ;;  %v810_v32 = vadd.f32 %v1063_v0, %v809_v24 }
 0x60f   :  { %v1235_v25 = vpop.f32.mrf.mxu1 }
 0x610   :  { %v814_v34 = vsel %vm813_vm7, %v810_v32, -inf }
 0x611   :  { %v900_v27 = vpop.f32.mrf.mxu1 }
 0x612   :  { %v901_v28 = vadd.f32 %v1065_v26, %v900_v27 }
 0x613   :  { %v1240_v29 = vpop.f32.mrf.mxu1 }
 0x614   :  { %v904_v30 = vmax.f32 %v901_v28, 0.0 }
 0x616   :  { %1244 = vmatmul.mubr.msk.f32.vlgmr.msra.gmra.mxu1 %vm402_vm6, %v904_v30  ;;  %v906_v31 = vmul.f32 %v904_v30, %v904_v30 }
 0x618   :  { %v907_v33 = vsel %vm402_vm6, %v906_v31, 0.0 }
 0x619   :  { %908 = vadd.xlane.f32.xlu1 %v907_v33 }
 0x61d   :  { %815 = vmax.xlane.f32.xlu1 %v814_v34 }
 0x6a2   :  { %v909_v35 = vpop.xlane.xlu1 %908 }
 0x6a3   :  { %v991_v46 = vadd.f32 %v1069_v44, %v909_v35 }
 0x6a6   :  { %v816_v36 = vpop.xlane.xlu1 %815 }
 0x6a7   :  { %v817_v37 = vsub.f32 %v810_v32, %v816_v36 }
 0x6a9   :  { %v818_v38 = vmul.f32 1.442695, %v817_v37 }
 0x6ab   :  { %1261 = vpow2.f32 %v818_v38 }
 0x6b8   :  { %v1262_v39 = vpop.eup %1261 }
 0x6b9   :  { %v820_v40 = vsel %vm813_vm7, %v1262_v39, 0.0 }
 0x6ba   :  { %821 = vadd.xlane.f32.xlu0 %v820_v40 }
 0x6ce   :  { %v727_v41 = vpop.f32.mrf.mxu0 }
 0x6cf   :  { %v728_v62 = vadd.f32 %v1060_v61, %v727_v41 }
 0x6d0   :  { %v1230_v43 = vpop.f32.mrf.mxu0 }
 0x6d1   :  { %v1062_v63 = vmul.f32 -1.442695, %v728_v62 }
 0x6d6   :  { %v982_v45 = vpop.f32.mrf.mxu1 }
 0x6d7   :  { %v992_v47 = vmul.f32 2.0, %v982_v45 }
 0x6d8   :  { %v1245_v48 = vpop.f32.mrf.mxu1 }
 0x6d9   :  { %v993_v49 = vsub.f32 %v991_v46, %v992_v47 }
 0x6db   :  { %v994_v51 = vmax.f32 %v993_v49, 0.0 }
 0x6dd   :  { %v995_v52 = vadd.f32 1.0, %v994_v51 }
 0x6df   :  { %1263 = vrcp.f32 %v995_v52 }
 0x6ec   :  { %v1264_v53 = vpop.eup %1263 }
 0x6ed   :  { %v998_v54 = vsel %vm402_vm6, %v1264_v53, 0.0 }
 0x6ee   :  { %999 = vadd.xlane.f32.xlu1 %v998_v54 }
 0x6ff   :  { %1003 = vrot.lane.b32.xlu1 %v1418_v42, %s1347_s21 }
 0x703   :  { %1006 = vrot.lane.b32.xlu1 %v1422_v50, %s1348_s22 }
 0x743   :  { %v822_v55 = vpop.xlane.xlu0 %821 }
 0x744   :  { %1265 = vrcp.f32 %v822_v55 }
 0x751   :  { %v1266_v56 = vpop.eup %1265 }
 0x752   :  { %v824_v57 = vmul.f32 %v1266_v56, %v1262_v39 }
 0x754   :  { %1010 = vrot.lane.b32.xlu1 %v824_v57, %s1349_s23 }
 0x777   :  { %v1000_v58 = vpop.xlane.xlu1 %999 }
 0x778   :  { %1267 = vrcp.f32 %v1000_v58 }
 0x779   :  { %1269 = vpow2.f32 %v1062_v63 }
 0x77b   :  { %v1004_v50 = vpop.permute.xlu1 %1003 }
 0x77f   :  { %v1007_v2 = vpop.permute.xlu1 %1006 }
 0x785   :  { %v1268_v59 = vpop.eup %1267 }
 0x786   :  { %v1002_v60 = vmul.f32 %v1268_v59, %v1264_v53  ;;  %v1270_v42 = vpop.eup %1269 }
 0x787   :  { %v734_v1 = vadd.f32 1.0, %v1270_v42 }
 0x788   :  { %1014 = vrot.lane.b32.xlu1 %v1002_v60, %s1350_s24 }
 0x789   :  { %1271 = vrcp.f32 %v734_v1 }
 0x796   :  { %v1272_v3 = vpop.eup %1271 }
 0x797   :  { %v1017_v4 = vsel %vm48_vm2, %v1272_v3, %v1004_v50 }
 0x798   :  { %v1019_v6 = vsel %vm1018_vm8, %v1017_v4, %v1004_v50 }
 0x799   :  { %v1021_v7 = vsel %vm1020_vm9, %v1019_v6, %v1007_v2 }
 0x7c6   :  { %v1011_v5 = vpop.permute.xlu1 %1010 }
 0x7c7   :  { %v1023_v8 = vsel %vm1022_vm10, %v1021_v7, %v1011_v5 }
 0x7fa   :  { %v1015_v9 = vpop.permute.xlu1 %1014 }
 0x7fb   :  { %v1025_v10 = vsel %vm1024_vm11, %v1023_v8, %v1015_v9 }
 0x7fc   :  { %v1027_v11 = vsel %vm1026_vm12, %v1025_v10, 0.0 }
 0x7fd   :  { %1028 = vst [vmem:[#allocation7] sm:$0xff] %v1027_v11 }
 0x7fe   :  { %1324 = shalt.err (!%p1321_p0)
}
 0x7ff   :  { %1038 = dma.vmem_to_hbm [thread:$0]  %s1036_s26, 128, %s1474_s2, [#allocation4]  }
 0x800   :  { %1337 = dma.done.wait [#allocation4], 128  }
 0x801   :  { %1338 = vsyncadd [#allocation4], 4294967168 }
 0x802   :  { %1042 = vsyncpa [#allocation3], 1 }
 0x803   :  { %1043 = vsyncpa [#allocation6], 1 }
 0x804   :  { %1044 = vsyncpa [#allocation4], 1 }

</bundles_post_ra>
